<compile_context>
chip_gen: v7x
topology: tpu7x:2x2x1
jax: 0.10.0
libtpu: 0.0.40
codegen_flags: <defaults>
</compile_context>

<pallas_src>
import math

import jax
import jax.numpy as jnp
from jax.experimental import pallas as pl
from jax.experimental.pallas import tpu as pltpu


# ---------------------------------------------------------------------------
# Interpolation-matrix construction (plain JAX glue, deterministic).
# ---------------------------------------------------------------------------
def _resize_matrix(in_size: int, out_size: int, antialias: bool = True):
    """Dense 1-D bilinear (triangle-filter) interpolation matrix (out, in).

    antialias=True matches torchvision.transforms.Resize's default for
    tensors (widened triangle filter when downsampling); antialias=False
    matches F.interpolate(mode='bilinear', align_corners=False).
    Both coincide when upsampling.
    """
    scale = in_size / out_size
    inv_scale = 1.0 / scale if (antialias and scale > 1.0) else 1.0
    centers = (jnp.arange(out_size, dtype=jnp.float32) + 0.5) * scale   # (out,)
    idx = jnp.arange(in_size, dtype=jnp.float32)                        # (in,)
    arg = (idx[None, :] - centers[:, None] + 0.5) * inv_scale
    w = jnp.maximum(0.0, 1.0 - jnp.abs(arg))
    w = w / jnp.sum(w, axis=1, keepdims=True)
    return w.astype(jnp.float32)


def _output_size(in_hw, size):
    """torchvision semantics: int size -> match the smaller edge."""
    h, w = in_hw
    if isinstance(size, (tuple, list)):
        if len(size) == 2:
            return int(size[0]), int(size[1])
        size = size[0]
    size = int(size)
    short, long = (w, h) if w <= h else (h, w)
    new_short = size
    new_long = max(1, int(new_short * long / short))
    new_w, new_h = (new_short, new_long) if w <= h else (new_long, new_short)
    return new_h, new_w


def _finalize(val, dtype):
    """Cast the f32 result to the output dtype (round+clip for integers)."""
    if jnp.issubdtype(dtype, jnp.floating):
        return val.astype(dtype)
    info = jnp.iinfo(dtype)
    # NOTE: round-half-to-even here vs torchvision's fixed-point round-half-up
    # for uint8; exact .5 values can differ by 1 LSB.
    return jnp.clip(jnp.round(val), info.min, info.max).astype(dtype)


# ---------------------------------------------------------------------------
# Kernels (both resize directions as single big 2-D MXU matmuls).
# ---------------------------------------------------------------------------
def _make_resize_kernel(tb, h_in, w_in, h_out, w_out, w_first, compute_dtype):
    if w_first:
        def kernel(x_ref, wht_ref, wwt_ref, o_ref):
            x = x_ref[...].astype(compute_dtype)                      # (tb*H_in, W_in)
            # W direction: one big matmul for the whole plane block.
            y = jnp.dot(x, wwt_ref[...],
                        preferred_element_type=jnp.float32)           # (tb*H_in, W_out) f32
            # Re-stack planes via a per-plane minor-dims transpose (XLU) so the
            # H direction is also a single big matmul with M = tb*W_out.
            y = jnp.transpose(y.reshape(tb, h_in, w_out), (0, 2, 1))  # (tb, W_out, H_in)
            y = y.reshape(tb * w_out, h_in)
            z = jnp.dot(y.astype(compute_dtype), wht_ref[...],
                        preferred_element_type=jnp.float32)           # (tb*W_out, H_out) f32
            z = jnp.transpose(z.reshape(tb, w_out, h_out), (0, 2, 1)) # (tb, H_out, W_out)
            o_ref[...] = _finalize(z.reshape(tb * h_out, w_out), o_ref.dtype)
        return kernel

    def kernel(x_ref, wht_ref, wwt_ref, o_ref):
        x = x_ref[...].astype(compute_dtype)                          # (tb*H_in, W_in)
        xt = jnp.transpose(x.reshape(tb, h_in, w_in), (0, 2, 1))      # (tb, W_in, H_in)
        xt = xt.reshape(tb * w_in, h_in)
        r = jnp.dot(xt, wht_ref[...],
                    preferred_element_type=jnp.float32)               # (tb*W_in, H_out) f32
        r = jnp.transpose(r.reshape(tb, w_in, h_out), (0, 2, 1))      # (tb, H_out, W_in)
        r = r.reshape(tb * h_out, w_in)
        out = jnp.dot(r.astype(compute_dtype), wwt_ref[...],
                      preferred_element_type=jnp.float32)             # (tb*H_out, W_out) f32
        o_ref[...] = _finalize(out, o_ref.dtype)
    return kernel


# ---------------------------------------------------------------------------
# Wrapper.
# ---------------------------------------------------------------------------
def _device_info():
    """(physical VMEM bytes, TensorCores per device), with safe fallbacks."""
    vmem = 64 * 1024 * 1024          # v7x-safe fallback
    n_tc = 1
    try:
        vmem = int(pltpu.get_tpu_info().vmem_capacity_bytes)
    except Exception:
        pass
    try:
        dev = jax.devices()[0]
        kind = str(getattr(dev, 'device_kind', '')).lower()
        cores = getattr(dev, 'num_cores', None)
        if isinstance(cores, int) and cores > 0:
            n_tc = cores
        elif any(tag in kind for tag in ('v4', 'v5p', 'v7', '7x')):
            n_tc = 2
    except Exception:
        pass
    return vmem, n_tc


def _choose_block_planes(b, per_plane, weight_bytes, budget, h_in, h_out, n_cores):
    """Planes per grid step.  Keeps block sublane dims (tb*H) multiples of 8."""
    def _align_req(h):
        return 8 // math.gcd(8, h)
    a1, a2 = _align_req(h_in), _align_req(h_out)
    align = a1 * a2 // math.gcd(a1, a2)        # lcm, divides 8

    avail = max(per_plane, budget - weight_bytes)
    tb = max(1, avail // max(1, per_plane))
    if tb >= b:
        tb = b
        # Multi-TensorCore chips (v7x-style): keep >= 2 grid steps so the
        # "parallel" plane axis can be sharded, if that stays layout-legal.
        if n_cores >= 2 and b >= 2:
            half = -(-b // 2)
            if half % align == 0:
                tb = half
    else:
        tb = max(align, (tb // align) * align)
    return int(min(tb, b))


def pallas_bilinear_resize(image, size, *, antialias=True,
                           use_bf16_operands=False):
    """image: (N, C, H_in, W_in) -> (N, C, H_out, W_out)."""
    n, c, h_in, w_in = image.shape
    h_out, w_out = _output_size((h_in, w_in), size)
    b = n * c

    # f32 default keeps results within ~1e-6 of the torchvision/f32 reference.
    # bf16 operands are the fast path on v6e/v7x when uint8-level accuracy is
    # enough; accumulation and the inter-matmul intermediate stay f32.
    compute_dtype = jnp.bfloat16 if use_bf16_operands else jnp.float32
    cd = jnp.dtype(compute_dtype).itemsize
    in_bytes = jnp.dtype(image.dtype).itemsize
    out_bytes = in_bytes

    # Transposed weights so both dots keep the big plane-block axis as M.
    wht = _resize_matrix(h_in, h_out, antialias).T.astype(compute_dtype)   # (H_in, H_out)
    wwt = _resize_matrix(w_in, w_out, antialias).T.astype(compute_dtype)   # (W_in, W_out)

    # Matmul ordering minimizing total MACs (static shapes).
    cost_w_first = h_in * w_out * (w_in + h_out)
    cost_h_first = w_in * h_out * (h_in + w_out)
    w_first = cost_w_first <= cost_h_first
    mid = h_in * w_out if w_first else h_out * w_in

    vmem_cap, n_cores = _device_info()
    vmem_budget = int(vmem_cap * 0.72)     # headroom for Mosaic internals

    # Conservative per-plane VMEM footprint: double-buffered in/out DMA tiles,
    # cast/transposed copies of the input, intermediate + its transposed copy,
    # and pre-store f32 result copies.  Real element sizes (uint8-aware).
    per_plane = ((2 * in_bytes + 2 * cd) * h_in * w_in
                 + (2 * out_bytes + 2 * 4) * h_out * w_out
                 + (2 * 4 + cd) * mid)
    weight_bytes = 2 * (h_in * h_out + w_in * w_out) * cd

    tb = _choose_block_planes(b, per_plane, weight_bytes, vmem_budget,
                              h_in, h_out, n_cores)
    b_pad = pl.cdiv(b, tb) * tb

    x2d = image.reshape(b * h_in, w_in)             # free view of NCHW
    if b_pad != b:
        x2d = jnp.pad(x2d, ((0, (b_pad - b) * h_in), (0, 0)))

    vmem_limit = int(min(vmem_cap - (4 << 20),
                         max(32 << 20, tb * per_plane + weight_bytes + (8 << 20))))

    kernel = _make_resize_kernel(tb, h_in, w_in, h_out, w_out, w_first,
                                 compute_dtype)

    out2d = pl.pallas_call(
        kernel,
        out_shape=jax.ShapeDtypeStruct((b_pad * h_out, w_out), image.dtype),
        grid_spec=pltpu.PrefetchScalarGridSpec(
            num_scalar_prefetch=0,
            grid=(b_pad // tb,),
            in_specs=[
                pl.BlockSpec((tb * h_in, w_in), lambda i: (i, 0)),
                pl.BlockSpec((h_in, h_out), lambda i: (0, 0)),
                pl.BlockSpec((w_in, w_out), lambda i: (0, 0)),
            ],
            out_specs=pl.BlockSpec((tb * h_out, w_out), lambda i: (i, 0)),
        ),
        compiler_params=pltpu.CompilerParams(
            dimension_semantics=("parallel",),
            vmem_limit_bytes=vmem_limit),
    )(x2d, wht, wwt)

    return out2d[: b * h_out].reshape(n, c, h_out, w_out)


class Resize:
    """JAX/Pallas equivalent of the PyTorch Resize transform (BILINEAR)."""

    def __init__(self, size, antialias=True):
        # TODO(synk): only BILINEAR interpolation is implemented.
        self.size = size
        self.antialias = antialias

    def __call__(self, inputs: dict) -> dict:
        inputs['image'] = pallas_bilinear_resize(
            inputs['image'], self.size, antialias=self.antialias)
        return inputs


if __name__ == "__main__":
    key = jax.random.PRNGKey(0)
    # Small NCHW image, consistent with a torchvision image tensor.
    x = jax.random.normal(key, (2, 4, 16, 16), dtype=jnp.float32)

    resize = Resize(size=(8, 8))
    out = resize({'image': x})
    img_out = jax.block_until_ready(out['image'])

    assert img_out.shape == (2, 4, 8, 8), img_out.shape
    assert img_out.dtype == jnp.float32

    # Numerical sanity check against a plain-JAX separable reference.
    wh = _resize_matrix(16, 8, antialias=True)          # (8, 16)
    ww = _resize_matrix(16, 8, antialias=True)          # (8, 16)
    ref = jnp.einsum('oh,nchw,qw->ncoq', wh, x, ww)
    assert jnp.allclose(img_out, ref, atol=1e-4, rtol=1e-4), \
        float(jnp.max(jnp.abs(img_out - ref)))

    print("KERNEL_OK")
</pallas_src>

<mosaic_0001>
module attributes {stable_mosaic.version = 11 : i64} {
  func.func @kernel(%arg0: i32, %arg1: memref<128x16xf32, #tpu.memory_space<vmem>>, %arg2: memref<16x8xf32, #tpu.memory_space<vmem>>, %arg3: memref<16x8xf32, #tpu.memory_space<vmem>>, %arg4: memref<64x8xf32, #tpu.memory_space<vmem>>) attributes {dimension_semantics = [#tpu.dimension_semantics<parallel>], iteration_bounds = array<i64: 1>, scalar_prefetch = 0 : i64, scratch_operands = 0 : i64, tpu.core_type = #tpu.core_type<tc>, window_params = [{transform_indices = @transform_0, window_bounds = array<i64: 128, 16>}, {pipeline_mode = #tpu.pipeline_mode<synchronous>, transform_indices = @transform_1, window_bounds = array<i64: 16, 8>}, {pipeline_mode = #tpu.pipeline_mode<synchronous>, transform_indices = @transform_2, window_bounds = array<i64: 16, 8>}, {transform_indices = @transform_3, window_bounds = array<i64: 64, 8>}]} {
    %c0 = arith.constant 0 : index
    %c0_0 = arith.constant 0 : index
    %0 = vector.load %arg1[%c0, %c0_0] : memref<128x16xf32, #tpu.memory_space<vmem>>, vector<128x16xf32>
    %c0_1 = arith.constant 0 : index
    %c0_2 = arith.constant 0 : index
    %1 = vector.load %arg3[%c0_1, %c0_2] : memref<16x8xf32, #tpu.memory_space<vmem>>, vector<16x8xf32>
    %cst = arith.constant dense<0.000000e+00> : vector<128x8xf32>
    %2 = tpu.matmul %0, %1, %cst {dimension_numbers = #tpu.dot_dimension_numbers<[1], [0], [0], [1], [0, 0, 1, 1], [], []>} : vector<128x16xf32>, vector<16x8xf32>, vector<128x8xf32> -> vector<128x8xf32>
    %3 = vector.shape_cast %2 : vector<128x8xf32> to vector<8x16x8xf32>
    %4 = tpu.transpose %3, [0, 2, 1] : vector<8x16x8xf32> -> vector<8x8x16xf32>
    %5 = vector.shape_cast %4 : vector<8x8x16xf32> to vector<64x16xf32>
    %c0_3 = arith.constant 0 : index
    %c0_4 = arith.constant 0 : index
    %6 = vector.load %arg2[%c0_3, %c0_4] : memref<16x8xf32, #tpu.memory_space<vmem>>, vector<16x8xf32>
    %cst_5 = arith.constant dense<0.000000e+00> : vector<64x8xf32>
    %7 = tpu.matmul %5, %6, %cst_5 {dimension_numbers = #tpu.dot_dimension_numbers<[1], [0], [0], [1], [0, 0, 1, 1], [], []>} : vector<64x16xf32>, vector<16x8xf32>, vector<64x8xf32> -> vector<64x8xf32>
    %8 = vector.shape_cast %7 : vector<64x8xf32> to vector<8x8x8xf32>
    %9 = tpu.transpose %8, [0, 2, 1] : vector<8x8x8xf32> -> vector<8x8x8xf32>
    %10 = vector.shape_cast %9 : vector<8x8x8xf32> to vector<64x8xf32>
    %c0_6 = arith.constant 0 : index
    %c0_7 = arith.constant 0 : index
    %11 = vector.load %arg4[%c0_6, %c0_7] : memref<64x8xf32, #tpu.memory_space<vmem>>, vector<64x8xf32>
    tpu.vector_store %arg4[%c0_6, %c0_7], %10 {strides = array<i32>} : memref<64x8xf32, #tpu.memory_space<vmem>>, vector<64x8xf32>,
    return
  }
  func.func @transform_0(%arg0: i32) -> (i32, i32) {
    %c0_i32 = arith.constant 0 : i32
    %c0_i32_0 = arith.constant 0 : i32
    return %arg0, %c0_i32 : i32, i32
  }
  func.func @transform_1(%arg0: i32) -> (i32, i32) {
    %c0_i32 = arith.constant 0 : i32
    %c0_i32_0 = arith.constant 0 : i32
    %c0_i32_1 = arith.constant 0 : i32
    return %c0_i32, %c0_i32_0 : i32, i32
  }
  func.func @transform_2(%arg0: i32) -> (i32, i32) {
    %c0_i32 = arith.constant 0 : i32
    %c0_i32_0 = arith.constant 0 : i32
    %c0_i32_1 = arith.constant 0 : i32
    return %c0_i32, %c0_i32_0 : i32, i32
  }
  func.func @transform_3(%arg0: i32) -> (i32, i32) {
    %c0_i32 = arith.constant 0 : i32
    %c0_i32_0 = arith.constant 0 : i32
    return %arg0, %c0_i32 : i32, i32
  }
}

</mosaic_0001>

<bundles_post_ra>
// kernel: tpu_custom_call.1
= control target key start
LH: loop header
LB: loop body
LE: loop exit
PB: predicated region body
PF: predicated region fallthrough
CT: control target
= control target key end

     0   :  { %vm32_vm0 = vcmask 130048   ;;  %vm869_vm1 = vcmask 64512   ;;  %s1125_s2 = inlined_call_operand.vmem [shape: f32[16,8], index: 2, kind: input, shape index: {}]   ;;  %s1126_s0 = inlined_call_operand.vmem [shape: f32[128,16], index: 0, kind: input, shape index: {}]   ;;  %s1127_s1 = inlined_call_operand.vmem [shape: f32[16,8], index: 1, kind: input, shape index: {}]   ;;  %s1128_s3 = inlined_call_operand.vmem [shape: f32[64,8], index: 3, kind: output, shape index: {}]  }
   0x1   :  { %v30_v0 = vld [vmem:[%s1125_s2] sm:$0xff]  ;;  %v31_v1 = vld [vmem:[%s1125_s2 + $0x8] sm:$0xff]  ;;  %v16_v6 = vld [vmem:[%s1126_s0 + $0x10] sm:$0xff] }
   0x2   :  { %v14_v2 = vld [vmem:[%s1126_s0] sm:$0xff]  ;;  %v978_v3 = vpack.c.bf16 %v31_v1, %v30_v0  ;;  %v15_v4 = vld [vmem:[%s1126_s0 + $0x8] sm:$0xff]  ;;  %v28_v8 = vld [vmem:[%s1126_s0 + $0x70] sm:$0xff] }
   0x3   :  { %938 = vmatprep.mubr.msk.f32.mxu0 %vm32_vm0, %v14_v2  ;;  %v26_v5 = vld [vmem:[%s1126_s0 + $0x60] sm:$0xff]  ;;  %v27_v7 = vld [vmem:[%s1126_s0 + $0x68] sm:$0xff]  ;;  %v17_v9 = vld [vmem:[%s1126_s0 + $0x18] sm:$0xff] }
   0x4   :  { %979 = vmatprep.subr.bf16.mxu0 %v978_v3  ;;  %986 = vmatprep.subr.bf16.mxu1 %v978_v3  ;;  %v29_v10 = vld [vmem:[%s1126_s0 + $0x78] sm:$0xff]  ;;  %v18_v11 = vld [vmem:[%s1126_s0 + $0x20] sm:$0xff]  ;;  %v19_v12 = vld [vmem:[%s1126_s0 + $0x28] sm:$0xff] }
   0x5   :  { %981 = vmatpush3.bf16.msra.mxu0 %v978_v3  ;;  %987 = vmatpush3.bf16.msra.mxu1 %v978_v3  ;;  %v20_v13 = vld [vmem:[%s1126_s0 + $0x30] sm:$0xff]  ;;  %v21_v14 = vld [vmem:[%s1126_s0 + $0x38] sm:$0xff]  ;;  %v22_v15 = vld [vmem:[%s1126_s0 + $0x40] sm:$0xff] }
   0x6   :  { %956 = vmatprep.mubr.msk.f32.mxu1 %vm32_vm0, %v26_v5  ;;  %v23_v16 = vld [vmem:[%s1126_s0 + $0x48] sm:$0xff]  ;;  %v24_v17 = vld [vmem:[%s1126_s0 + $0x50] sm:$0xff]  ;;  %v25_v18 = vld [vmem:[%s1126_s0 + $0x58] sm:$0xff] }
   0x7   :  { %v482_v19 = vld [vmem:[%s1127_s1] sm:$0xff]  ;;  %v483_v20 = vld [vmem:[%s1127_s1 + $0x8] sm:$0xff] }
   0x8   :  { %939 = vmatmul.mubr.msk.f32.vlgmr.msra.gmra.mrb[0].mxu0 %vm32_vm0, %v15_v4  ;;  %957 = vmatmul.mubr.msk.f32.vlgmr.msra.gmra.mrb[0].mxu1 %vm32_vm0, %v27_v7  ;;  %v982_v21 = vpack.c.bf16 %v483_v20, %v482_v19 }
   0x9   :  { %941 = vmatprep.mubr.msk.f32.mxu0 %vm32_vm0, %v16_v6  ;;  %959 = vmatprep.mubr.msk.f32.mxu1 %vm32_vm0, %v28_v8 }
   0xa   :  { %983 = vmatprep.subr.bf16.mxu1 %v982_v21 }
   0xb   :  { %985 = vmatpush3.bf16.msra.mxu1 %v982_v21 }
   0xc   :  { %942 = vmatmul.mubr.msk.f32.gmra.mrb[2].mxu0 %vm32_vm0, %v17_v9  ;;  %960 = vmatmul.mubr.msk.f32.gmra.mrb[2].mxu1 %vm32_vm0, %v29_v10 }
   0xd   :  { %944 = vmatprep.mubr.msk.f32.mxu0 %vm32_vm0, %v18_v11 }
  0x10   :  { %945 = vmatmul.mubr.msk.f32.gmra.mrb[4].mxu0 %vm32_vm0, %v19_v12 }
  0x11   :  { %947 = vmatprep.mubr.msk.f32.mxu0 %vm32_vm0, %v20_v13 }
  0x14   :  { %948 = vmatmul.mubr.msk.f32.gmra.mrb[6].mxu0 %vm32_vm0, %v21_v14 }
  0x15   :  { %950 = vmatprep.mubr.msk.f32.mxu0 %vm32_vm0, %v22_v15 }
  0x18   :  { %951 = vmatmul.mubr.msk.f32.gmra.mrb[8].mxu0 %vm32_vm0, %v23_v16 }
  0x19   :  { %953 = vmatprep.mubr.msk.f32.mxu0 %vm32_vm0, %v24_v17 }
  0x1c   :  { %954 = vmatmul.mubr.msk.f32.gmra.mrb[10].mxu0 %vm32_vm0, %v25_v18 }
  0xdb   :  { %v940_v22 = vpop.f32.mrb[0].mxu0  ;;  %v958_v23 = vpop.f32.mrb[0].mxu1 }
  0xdc   :  { %v147_v24 = vpop.f32.mrb[1].mxu0  ;;  %v207_v25 = vpop.f32.mrb[1].mxu1 }
  0xdd   :  { %226 = vxpose.xlu0.b32.start [1/2] (short) (narrow) %v147_v24, 8 }
  0xdf   :  { %v943_v26 = vpop.f32.mrb[2].mxu0  ;;  %v961_v27 = vpop.f32.mrb[2].mxu1 }
  0xe0   :  { %v157_v28 = vpop.f32.mrb[3].mxu0  ;;  %v217_v29 = vpop.f32.mrb[3].mxu1 }
  0xe1   :  { %227 = vxpose.xlu0.b32.end [2/2] (short) (narrow) %v940_v22, 8  ;;  %258 = vxpose.xlu1.b32.start [1/2] (short) (narrow) %v157_v28, 8 }
  0xe3   :  { %v946_v30 = vpop.f32.mrb[4].mxu0 }
  0xe4   :  { %v167_v31 = vpop.f32.mrb[5].mxu0 }
  0xe5   :  { %259 = vxpose.xlu1.b32.end [2/2] (short) (narrow) %v943_v26, 8  ;;  %290 = vxpose.xlu0.b32.start [1/2] (short) (narrow) %v167_v31, 8 }
  0xe7   :  { %v949_v32 = vpop.f32.mrb[6].mxu0 }
  0xe8   :  { %v177_v33 = vpop.f32.mrb[7].mxu0 }
  0xe9   :  { %291 = vxpose.xlu0.b32.end [2/2] (short) (narrow) %v946_v30, 8  ;;  %322 = vxpose.xlu1.b32.start [1/2] (short) (narrow) %v177_v33, 8 }
  0xeb   :  { %v952_v34 = vpop.f32.mrb[8].mxu0 }
  0xec   :  { %v187_v35 = vpop.f32.mrb[9].mxu0 }
  0xed   :  { %323 = vxpose.xlu1.b32.end [2/2] (short) (narrow) %v949_v32, 8  ;;  %354 = vxpose.xlu0.b32.start [1/2] (short) (narrow) %v187_v35, 8 }
  0xef   :  { %v955_v36 = vpop.f32.mrb[10].mxu0 }
  0xf0   :  { %v197_v37 = vpop.f32.mrb[11].mxu0 }
  0xf1   :  { %355 = vxpose.xlu0.b32.end [2/2] (short) (narrow) %v952_v34, 8  ;;  %386 = vxpose.xlu1.b32.start [1/2] (short) (narrow) %v197_v37, 8 }
  0xf5   :  { %418 = vxpose.xlu0.b32.start [1/2] (short) (narrow) %v207_v25, 8  ;;  %387 = vxpose.xlu1.b32.end [2/2] (short) (narrow) %v955_v36, 8 }
  0xf9   :  { %419 = vxpose.xlu0.b32.end [2/2] (short) (narrow) %v958_v23, 8  ;;  %450 = vxpose.xlu1.b32.start [1/2] (short) (narrow) %v217_v29, 8 }
  0xfd   :  { %451 = vxpose.xlu1.b32.end [2/2] (short) (narrow) %v961_v27, 8 }
 0x15d   :  { %v242_v38 = vpop.trf.xlu0 }
 0x15e   :  { %966 = vmatprep.mubr.msk.f32.mxu1 %vm32_vm0, %v242_v38 }
 0x161   :  { %v274_v39 = vpop.trf.xlu1 }
 0x162   :  { %967 = vmatmul.mubr.msk.f32.vlgmr.msra.gmra.mrb[4].mxu1 %vm32_vm0, %v274_v39 }
 0x165   :  { %v306_v40 = vpop.trf.xlu0 }
 0x166   :  { %969 = vmatprep.mubr.msk.f32.mxu1 %vm32_vm0, %v306_v40 }
 0x169   :  { %v338_v41 = vpop.trf.xlu1 }
 0x16a   :  { %970 = vmatmul.mubr.msk.f32.gmra.mrb[6].mxu1 %vm32_vm0, %v338_v41 }
 0x16d   :  { %v370_v42 = vpop.trf.xlu0 }
 0x16e   :  { %972 = vmatprep.mubr.msk.f32.mxu1 %vm32_vm0, %v370_v42 }
 0x171   :  { %v402_v43 = vpop.trf.xlu1 }
 0x172   :  { %973 = vmatmul.mubr.msk.f32.gmra.mrb[8].mxu1 %vm32_vm0, %v402_v43 }
 0x175   :  { %v434_v44 = vpop.trf.xlu0 }
 0x176   :  { %975 = vmatprep.mubr.msk.f32.mxu1 %vm32_vm0, %v434_v44 }
 0x179   :  { %v466_v45 = vpop.trf.xlu1 }
 0x17a   :  { %976 = vmatmul.mubr.msk.f32.gmra.mrb[10].mxu1 %vm32_vm0, %v466_v45 }
 0x235   :  { %v968_v46 = vpop.f32.mrb[4].mxu1 }
 0x236   :  { %v574_v47 = vpop.f32.mrb[5].mxu1  ;;  %645 = vxpose.xlu1.b32.start.end [1/1] (short) (narrow) %v968_v46, 8 }
 0x237   :  { %613 = vxpose.xlu0.b32.start.end [1/1] (short) (narrow) %v574_v47, 8 }
 0x23d   :  { %v971_v48 = vpop.f32.mrb[6].mxu1 }
 0x23e   :  { %v584_v49 = vpop.f32.mrb[7].mxu1  ;;  %709 = vxpose.xlu1.b32.start.end [1/1] (short) (narrow) %v971_v48, 8 }
 0x23f   :  { %677 = vxpose.xlu0.b32.start.end [1/1] (short) (narrow) %v584_v49, 8 }
 0x245   :  { %v974_v50 = vpop.f32.mrb[8].mxu1 }
 0x246   :  { %v594_v51 = vpop.f32.mrb[9].mxu1  ;;  %773 = vxpose.xlu1.b32.start.end [1/1] (short) (narrow) %v974_v50, 8 }
 0x247   :  { %741 = vxpose.xlu0.b32.start.end [1/1] (short) (narrow) %v594_v51, 8 }
 0x24d   :  { %v977_v52 = vpop.f32.mrb[10].mxu1 }
 0x24e   :  { %837 = vxpose.xlu1.b32.start.end [1/1] (short) (narrow) %v977_v52, 8  ;;  %v604_v53 = vpop.f32.mrb[11].mxu1 }
 0x24f   :  { %805 = vxpose.xlu0.b32.start.end [1/1] (short) (narrow) %v604_v53, 8 }
 0x2b6   :  { %v661_v54 = vpop.trf.xlu1 }
 0x2b7   :  { %v629_v55 = vpop.trf.xlu0  ;;  %871 = vst.msk [vmem:[%s1128_s3 + $0x8] sm:$0xff] %vm869_vm1, %v661_v54 }
 0x2b8   :  { %870 = vst.msk [vmem:[%s1128_s3] sm:$0xff] %vm869_vm1, %v629_v55 }
 0x2be   :  { %v725_v56 = vpop.trf.xlu1 }
 0x2bf   :  { %v693_v57 = vpop.trf.xlu0  ;;  %873 = vst.msk [vmem:[%s1128_s3 + $0x18] sm:$0xff] %vm869_vm1, %v725_v56 }
 0x2c0   :  { %872 = vst.msk [vmem:[%s1128_s3 + $0x10] sm:$0xff] %vm869_vm1, %v693_v57 }
 0x2c6   :  { %v789_v58 = vpop.trf.xlu1 }
 0x2c7   :  { %v757_v59 = vpop.trf.xlu0  ;;  %875 = vst.msk [vmem:[%s1128_s3 + $0x28] sm:$0xff] %vm869_vm1, %v789_v58 }
 0x2c8   :  { %874 = vst.msk [vmem:[%s1128_s3 + $0x20] sm:$0xff] %vm869_vm1, %v757_v59 }
 0x2ce   :  { %v853_v60 = vpop.trf.xlu1 }
 0x2cf   :  { %v821_v61 = vpop.trf.xlu0  ;;  %877 = vst.msk [vmem:[%s1128_s3 + $0x38] sm:$0xff] %vm869_vm1, %v853_v60 }
 0x2d0   :  { %876 = vst.msk [vmem:[%s1128_s3 + $0x30] sm:$0xff] %vm869_vm1, %v821_v61 }

</bundles_post_ra>
